<compile_context>
chip_gen: v5e
topology: v5e:2x2
jax: 0.10.0
libtpu: 0.0.40
codegen_flags: <defaults>
</compile_context>

<pallas_src>
import math
import functools

import numpy as np
import jax
import jax.numpy as jnp
from jax import lax
from jax.experimental import pallas as pl
from jax.experimental.pallas import tpu as pltpu


# --------------------------------------------------------------------------
# Kernel: one batch-block (block_b sequences) per grid step.
# --------------------------------------------------------------------------
def _encoder_layer_kernel(x_ref, p_ref,
                          wqk_ref, bqk_ref, wv_ref, wo_ref,
                          w1_ref, b1_ref, w2_ref, vec_ref,
                          out_ref, attn_ref,
                          o_slab,
                          *, n_heads, block_b, seq_len):
    eps = 1e-5
    bf16 = jnp.bfloat16
    M, D = x_ref.shape                   # M = block_b * seq_len
    S = seq_len
    H = n_heads
    Dh = D // H

    # Packed per-channel vectors (f32): rows = bv, bo, b2, g1, bt1, g2, bt2, pad
    vec = vec_ref[...]
    bv, bo, b2 = vec[0:1], vec[1:2], vec[2:3]
    g1, bt1 = vec[3:4], vec[4:5]
    g2, bt2 = vec[5:6], vec[6:7]

    x = x_ref[...]                       # (M, D) f32
    xp = x + p_ref[...]                  # pos-embed tile (M, D)

    # ---- fused Q|K projection (1/sqrt(Dh) pre-folded into W_q/b_q) and V ----
    qk = jnp.dot(xp.astype(bf16), wqk_ref[...],
                 preferred_element_type=jnp.float32) + bqk_ref[...]   # (M, 2D)
    v = jnp.dot(x.astype(bf16), wv_ref[...],
                preferred_element_type=jnp.float32) + bv              # (M, D)

    # Leading-dim split into blk_b-batched 3-D tensors (free: S % 8 == 0).
    q3 = qk[:, :D].reshape(block_b, S, D)
    k3 = qk[:, D:].reshape(block_b, S, D)
    v3 = v.reshape(block_b, S, D)

    # ---- attention: loop only over heads, batch over block_b inside MXU -----
    attn_heads = []
    for h in range(H):
        c = h * Dh
        qh = q3[:, :, c:c + Dh].astype(bf16)
        kh = k3[:, :, c:c + Dh].astype(bf16)
        vh = v3[:, :, c:c + Dh].astype(bf16)
        s = jnp.einsum('bqd,bkd->bqk', qh, kh,
                       preferred_element_type=jnp.float32)            # (b,S,S)
        s = s - jnp.max(s, axis=-1, keepdims=True)
        e = jnp.exp(s)
        # exact reciprocal: returned attention rows sum to 1
        a = e * pl.reciprocal(jnp.sum(e, axis=-1, keepdims=True), approx=False)
        attn_heads.append(a)
        oh = jnp.einsum('bqk,bkd->bqd', a.astype(bf16), vh,
                        preferred_element_type=jnp.float32)           # (b,S,Dh)
        o_slab[:, c:c + Dh] = oh.reshape(M, Dh)

    # One bulk store of all attention probabilities for this block.
    attn_ref[...] = jnp.stack(attn_heads, axis=1).astype(attn_ref.dtype)

    # ---- output projection + residual + LayerNorm1 --------------------------
    new_x = jnp.dot(o_slab[...].astype(bf16), wo_ref[...],
                    preferred_element_type=jnp.float32) + bo
    xr = x + new_x                       # residual (dropout == identity, eval)

    mu = jnp.mean(xr, axis=-1, keepdims=True)
    var = jnp.mean((xr - mu) ** 2, axis=-1, keepdims=True)
    y = (xr - mu) * lax.rsqrt(var + eps) * g1 + bt1

    # ---- FFN (conv1x1 == dense over last dim) + residual + LayerNorm2 -------
    h1 = jnp.dot(y.astype(bf16), w1_ref[...],
                 preferred_element_type=jnp.float32) + b1_ref[...]
    h1 = jnp.maximum(h1, 0.0)            # relu
    y2 = jnp.dot(h1.astype(bf16), w2_ref[...],
                 preferred_element_type=jnp.float32) + b2

    z = xr + y2
    mu2 = jnp.mean(z, axis=-1, keepdims=True)
    var2 = jnp.mean((z - mu2) ** 2, axis=-1, keepdims=True)
    out_ref[...] = ((z - mu2) * lax.rsqrt(var2 + eps) * g2 + bt2).astype(out_ref.dtype)


# --------------------------------------------------------------------------
# One-time parameter packing (hoisted out of the per-call wrapper).
# --------------------------------------------------------------------------
def pack_params(params, n_heads):
    D = params["wq"].shape[0]
    scale = 1.0 / math.sqrt(D // n_heads)
    bf16 = jnp.bfloat16
    wqk = jnp.concatenate([params["wq"] * scale, params["wk"]], axis=1).astype(bf16)
    bqk = jnp.concatenate([params["bq"] * scale, params["bk"]], axis=1).astype(jnp.float32)
    vec = jnp.concatenate(
        [params["bv"], params["bo"], params["b2"],
         params["gamma1"], params["beta1"], params["gamma2"], params["beta2"],
         jnp.zeros((1, D), jnp.float32)], axis=0)                     # (8, D)
    return {
        "wqk": wqk, "bqk": bqk,
        "wv": params["wv"].astype(bf16), "wo": params["wo"].astype(bf16),
        "w1": params["w1"].astype(bf16), "b1": params["b1"].astype(jnp.float32),
        "w2": params["w2"].astype(bf16), "vec": vec,
    }


def _vmem_budget_bytes():
    try:
        phys = pltpu.get_tpu_info().vmem_capacity_bytes
    except Exception:
        phys = 128 * 1024 * 1024
    # ~48 MiB on v7x (64 MiB physical), ~96 MiB on v5e/v6e (128 MiB physical);
    # headroom left for Mosaic scratch / semaphores.
    return int(min(phys * 3 // 4, 112 * 1024 * 1024))


def _choose_block_b(B, S, D, H, d_ff, attn_itemsize, weight_bytes, vmem_limit):
    f32 = 4
    # Per batch-element VMEM: double-buffered pipeline blocks + main temporaries
    # (qk, v, o_slab, h1, scores/probs, residual/LN temps).
    per_b = (2 * 2 * f32 * S * D
             + 2 * attn_itemsize * H * S * S
             + f32 * S * (3 * D + d_ff)
             + 3 * f32 * H * S * S
             + 4 * f32 * S * D)
    budget = max(per_b, int(vmem_limit * 0.8) - weight_bytes)
    cap_mem = max(1, budget // per_b)
    cap_rows = max(1, 512 // max(S, 1))   # ~512 matmul rows per grid step
    cap_grid = max(1, B // 2)             # >=2 grid steps: DMA overlap + v7x 2 TCs
    cap = min(B, cap_mem, cap_rows, cap_grid)
    for cand in range(int(cap), 0, -1):
        # block_b must divide B and keep the 2-D row blocks sublane-aligned.
        if B % cand == 0 and (cand * S) % 8 == 0:
            return cand
    return B  # whole-batch block (block == array dims: always legal)


# --------------------------------------------------------------------------
# Wrapper
# --------------------------------------------------------------------------
def encoder_layer_pallas(x, pos_embed, packed, n_heads, attn_dtype=jnp.float32):
    B, S, D = x.shape
    H = n_heads
    d_ff = packed["w1"].shape[-1]
    assert D % H == 0

    weight_bytes = sum(int(a.size) * a.dtype.itemsize for a in packed.values())
    vmem_limit = _vmem_budget_bytes()
    attn_itemsize = np.dtype(attn_dtype).itemsize
    block_b = _choose_block_b(B, S, D, H, d_ff, attn_itemsize, weight_bytes, vmem_limit)
    grid = (B // block_b,)
    rows = block_b * S

    x2d = x.reshape(B * S, D)
    pos_tile = jnp.tile(pos_embed.reshape(S, D), (block_b, 1)).astype(jnp.float32)

    # Constant operands: resident once in VMEM, not double-buffered.
    const = pl.BlockSpec(memory_space=pltpu.MemorySpace.VMEM)

    Mtot = B * S
    flops = int(2 * Mtot * D * (2 * D)          # Q|K projection
                + 2 * Mtot * D * D              # V projection
                + 4 * Mtot * S * D              # scores + attn@V
                + 2 * Mtot * D * D              # output projection
                + 4 * Mtot * D * d_ff)          # FFN
    bytes_accessed = int(x2d.size * 4 + pos_tile.size * 4 + weight_bytes
                         + Mtot * D * 4 + B * H * S * S * attn_itemsize)

    kernel = functools.partial(_encoder_layer_kernel, n_heads=H,
                               block_b=block_b, seq_len=S)

    out2d, attn = pl.pallas_call(
        kernel,
        out_shape=(jax.ShapeDtypeStruct((B * S, D), jnp.float32),
                   jax.ShapeDtypeStruct((B, H, S, S), attn_dtype)),
        grid_spec=pltpu.PrefetchScalarGridSpec(
            num_scalar_prefetch=0,
            grid=grid,
            in_specs=[
                pl.BlockSpec((rows, D), lambda i: (i, 0)),   # x row block
                const,   # pos-embed tile (rows, D)
                const,   # wqk  (bf16, scale folded into the Q half)
                const,   # bqk  (f32)
                const,   # wv   (bf16)
                const,   # wo   (bf16)
                const,   # w1   (bf16)
                const,   # b1   (f32)
                const,   # w2   (bf16)
                const,   # packed bias / LN vectors (8, D) f32
            ],
            out_specs=[
                pl.BlockSpec((rows, D), lambda i: (i, 0)),
                pl.BlockSpec((block_b, H, S, S), lambda i: (i, 0, 0, 0)),
            ],
            scratch_shapes=[pltpu.VMEM((rows, D), jnp.float32)],   # head-output slab
        ),
        compiler_params=pltpu.CompilerParams(
            dimension_semantics=("parallel",),
            vmem_limit_bytes=int(vmem_limit),
        ),
        cost_estimate=pl.CostEstimate(flops=flops,
                                      transcendentals=int(B * H * S * S),
                                      bytes_accessed=bytes_accessed),
    )(x2d, pos_tile, packed["wqk"], packed["bqk"], packed["wv"], packed["wo"],
      packed["w1"], packed["b1"], packed["w2"], packed["vec"])

    return out2d.reshape(B, S, D), attn


# --------------------------------------------------------------------------
# Pure-JAX f32 reference (same math) for a correctness check.
# --------------------------------------------------------------------------
def encoder_layer_ref(x, pos_embed, params, n_heads):
    B, S, D = x.shape
    Dh = D // n_heads
    p = jnp.broadcast_to(pos_embed, (B, S, D))
    xp = x + p
    q = xp @ params["wq"] + params["bq"]
    k = xp @ params["wk"] + params["bk"]
    v = x @ params["wv"] + params["bv"]
    q = q.reshape(B, S, n_heads, Dh).transpose(0, 2, 1, 3)
    k = k.reshape(B, S, n_heads, Dh).transpose(0, 2, 1, 3)
    v = v.reshape(B, S, n_heads, Dh).transpose(0, 2, 1, 3)
    s = jnp.einsum("bhqd,bhkd->bhqk", q, k) / math.sqrt(Dh)
    a = jax.nn.softmax(s, axis=-1)
    o = jnp.einsum("bhqk,bhkd->bhqd", a, v).transpose(0, 2, 1, 3).reshape(B, S, D)
    new_x = o @ params["wo"] + params["bo"]

    def ln(z, g, b):
        mu = jnp.mean(z, axis=-1, keepdims=True)
        var = jnp.mean((z - mu) ** 2, axis=-1, keepdims=True)
        return (z - mu) / jnp.sqrt(var + 1e-5) * g + b

    x2 = x + new_x
    y = ln(x2, params["gamma1"], params["beta1"])
    h = jnp.maximum(y @ params["w1"] + params["b1"], 0.0)
    y2 = h @ params["w2"] + params["b2"]
    return ln(x2 + y2, params["gamma2"], params["beta2"]), a


# --------------------------------------------------------------------------
def init_params(key, d_model, d_ff):
    ks = jax.random.split(key, 8)
    s = 0.05
    return {
        "wq": jax.random.normal(ks[0], (d_model, d_model), jnp.float32) * s,
        "wk": jax.random.normal(ks[1], (d_model, d_model), jnp.float32) * s,
        "wv": jax.random.normal(ks[2], (d_model, d_model), jnp.float32) * s,
        "wo": jax.random.normal(ks[3], (d_model, d_model), jnp.float32) * s,
        "bq": jnp.zeros((1, d_model), jnp.float32),
        "bk": jnp.zeros((1, d_model), jnp.float32),
        "bv": jnp.zeros((1, d_model), jnp.float32),
        "bo": jnp.zeros((1, d_model), jnp.float32),
        # conv1: Conv1d(d_model -> d_ff, k=1)  -> stored transposed [d_model, d_ff]
        "w1": jax.random.normal(ks[4], (d_model, d_ff), jnp.float32) * s,
        "b1": jax.random.normal(ks[5], (1, d_ff), jnp.float32) * s,
        # conv2: Conv1d(d_ff -> d_model, k=1)  -> stored transposed [d_ff, d_model]
        "w2": jax.random.normal(ks[6], (d_ff, d_model), jnp.float32) * s,
        "b2": jax.random.normal(ks[7], (1, d_model), jnp.float32) * s,
        "gamma1": jnp.ones((1, d_model), jnp.float32),
        "beta1": jnp.zeros((1, d_model), jnp.float32),
        "gamma2": jnp.ones((1, d_model), jnp.float32),
        "beta2": jnp.zeros((1, d_model), jnp.float32),
    }


if __name__ == "__main__":
    B, S, D, H = 2, 8, 32, 4
    d_ff = 4 * D  # 128

    key = jax.random.PRNGKey(0)
    kx, kp, kw = jax.random.split(key, 3)
    x = jax.random.normal(kx, (B, S, D), jnp.float32)
    pos_embed = jax.random.normal(kp, (1, S, D), jnp.float32)
    params = init_params(kw, D, d_ff)

    packed = pack_params(params, H)   # one-time packing / bf16 casts
    out, attn = encoder_layer_pallas(x, pos_embed, packed, H)
    out = jax.block_until_ready(out)
    attn = jax.block_until_ready(attn)

    out_ref, attn_ref = encoder_layer_ref(x, pos_embed, params, H)
    assert out.shape == (B, S, D) and attn.shape == (B, H, S, S)
    # bf16 MXU operands -> loosened tolerances vs the f32 reference.
    assert jnp.allclose(out, out_ref, atol=3e-2, rtol=3e-2)
    assert jnp.allclose(attn, attn_ref, atol=1e-2, rtol=1e-2)

    print("KERNEL_OK")
</pallas_src>

<mosaic_0001>
module attributes {stable_mosaic.version = 11 : i64} {
  func.func @_encoder_layer_kernel(%arg0: i32, %arg1: memref<8x32xf32, #tpu.memory_space<vmem>>, %arg2: memref<8x32xf32, #tpu.memory_space<vmem>>, %arg3: memref<32x64xbf16, #tpu.memory_space<vmem>>, %arg4: memref<1x64xf32, #tpu.memory_space<vmem>>, %arg5: memref<32x32xbf16, #tpu.memory_space<vmem>>, %arg6: memref<32x32xbf16, #tpu.memory_space<vmem>>, %arg7: memref<32x128xbf16, #tpu.memory_space<vmem>>, %arg8: memref<1x128xf32, #tpu.memory_space<vmem>>, %arg9: memref<128x32xbf16, #tpu.memory_space<vmem>>, %arg10: memref<8x32xf32, #tpu.memory_space<vmem>>, %arg11: memref<8x32xf32, #tpu.memory_space<vmem>>, %arg12: memref<1x4x8x8xf32, #tpu.memory_space<vmem>>, %arg13: memref<8x32xf32, #tpu.memory_space<vmem>>) attributes {dimension_semantics = [#tpu.dimension_semantics<parallel>], iteration_bounds = array<i64: 2>, scalar_prefetch = 0 : i64, scratch_operands = 1 : i64, tpu.core_type = #tpu.core_type<tc>, window_params = [{transform_indices = @transform_0, window_bounds = array<i64: 8, 32>}, {pipeline_mode = #tpu.pipeline_mode<synchronous>, transform_indices = @transform_1, window_bounds = array<i64: 8, 32>}, {pipeline_mode = #tpu.pipeline_mode<synchronous>, transform_indices = @transform_2, window_bounds = array<i64: 32, 64>}, {pipeline_mode = #tpu.pipeline_mode<synchronous>, transform_indices = @transform_3, window_bounds = array<i64: 1, 64>}, {pipeline_mode = #tpu.pipeline_mode<synchronous>, transform_indices = @transform_4, window_bounds = array<i64: 32, 32>}, {pipeline_mode = #tpu.pipeline_mode<synchronous>, transform_indices = @transform_5, window_bounds = array<i64: 32, 32>}, {pipeline_mode = #tpu.pipeline_mode<synchronous>, transform_indices = @transform_6, window_bounds = array<i64: 32, 128>}, {pipeline_mode = #tpu.pipeline_mode<synchronous>, transform_indices = @transform_7, window_bounds = array<i64: 1, 128>}, {pipeline_mode = #tpu.pipeline_mode<synchronous>, transform_indices = @transform_8, window_bounds = array<i64: 128, 32>}, {pipeline_mode = #tpu.pipeline_mode<synchronous>, transform_indices = @transform_9, window_bounds = array<i64: 8, 32>}, {transform_indices = @transform_10, window_bounds = array<i64: 8, 32>}, {transform_indices = @transform_11, window_bounds = array<i64: 1, 4, 8, 8>}]} {
    %c0 = arith.constant 0 : index
    %c0_0 = arith.constant 0 : index
    %0 = vector.load %arg10[%c0, %c0_0] : memref<8x32xf32, #tpu.memory_space<vmem>>, vector<8x32xf32>
    %1 = vector.extract_strided_slice %0 {offsets = [0, 0], sizes = [1, 32], strides = [1, 1]} : vector<8x32xf32> to vector<1x32xf32>
    %2 = vector.extract_strided_slice %0 {offsets = [1, 0], sizes = [1, 32], strides = [1, 1]} : vector<8x32xf32> to vector<1x32xf32>
    %3 = vector.extract_strided_slice %0 {offsets = [2, 0], sizes = [1, 32], strides = [1, 1]} : vector<8x32xf32> to vector<1x32xf32>
    %4 = vector.extract_strided_slice %0 {offsets = [3, 0], sizes = [1, 32], strides = [1, 1]} : vector<8x32xf32> to vector<1x32xf32>
    %5 = vector.extract_strided_slice %0 {offsets = [4, 0], sizes = [1, 32], strides = [1, 1]} : vector<8x32xf32> to vector<1x32xf32>
    %6 = vector.extract_strided_slice %0 {offsets = [5, 0], sizes = [1, 32], strides = [1, 1]} : vector<8x32xf32> to vector<1x32xf32>
    %7 = vector.extract_strided_slice %0 {offsets = [6, 0], sizes = [1, 32], strides = [1, 1]} : vector<8x32xf32> to vector<1x32xf32>
    %c0_1 = arith.constant 0 : index
    %c0_2 = arith.constant 0 : index
    %8 = vector.load %arg1[%c0_1, %c0_2] : memref<8x32xf32, #tpu.memory_space<vmem>>, vector<8x32xf32>
    %c0_3 = arith.constant 0 : index
    %c0_4 = arith.constant 0 : index
    %9 = vector.load %arg2[%c0_3, %c0_4] : memref<8x32xf32, #tpu.memory_space<vmem>>, vector<8x32xf32>
    %10 = arith.addf %8, %9 : vector<8x32xf32>
    %11 = arith.truncf %10 : vector<8x32xf32> to vector<8x32xbf16>
    %c0_5 = arith.constant 0 : index
    %c0_6 = arith.constant 0 : index
    %12 = vector.load %arg3[%c0_5, %c0_6] : memref<32x64xbf16, #tpu.memory_space<vmem>>, vector<32x64xbf16>
    %cst = arith.constant dense<0.000000e+00> : vector<8x64xf32>
    %13 = tpu.matmul %11, %12, %cst {dimension_numbers = #tpu.dot_dimension_numbers<[1], [0], [0], [1], [0, 0, 1, 1], [], []>} : vector<8x32xbf16>, vector<32x64xbf16>, vector<8x64xf32> -> vector<8x64xf32>
    %c0_7 = arith.constant 0 : index
    %c0_8 = arith.constant 0 : index
    %14 = vector.load %arg4[%c0_7, %c0_8] : memref<1x64xf32, #tpu.memory_space<vmem>>, vector<1x64xf32>
    %15 = vector.broadcast %14 : vector<1x64xf32> to vector<8x64xf32>
    %16 = arith.addf %13, %15 : vector<8x64xf32>
    %17 = arith.truncf %8 : vector<8x32xf32> to vector<8x32xbf16>
    %c0_9 = arith.constant 0 : index
    %c0_10 = arith.constant 0 : index
    %18 = vector.load %arg5[%c0_9, %c0_10] : memref<32x32xbf16, #tpu.memory_space<vmem>>, vector<32x32xbf16>
    %cst_11 = arith.constant dense<0.000000e+00> : vector<8x32xf32>
    %19 = tpu.matmul %17, %18, %cst_11 {dimension_numbers = #tpu.dot_dimension_numbers<[1], [0], [0], [1], [0, 0, 1, 1], [], []>} : vector<8x32xbf16>, vector<32x32xbf16>, vector<8x32xf32> -> vector<8x32xf32>
    %20 = vector.broadcast %1 : vector<1x32xf32> to vector<8x32xf32>
    %21 = arith.addf %19, %20 : vector<8x32xf32>
    %22 = vector.extract_strided_slice %16 {offsets = [0, 0], sizes = [8, 32], strides = [1, 1]} : vector<8x64xf32> to vector<8x32xf32>
    %23 = vector.shape_cast %22 : vector<8x32xf32> to vector<1x8x32xf32>
    %24 = vector.extract_strided_slice %16 {offsets = [0, 32], sizes = [8, 32], strides = [1, 1]} : vector<8x64xf32> to vector<8x32xf32>
    %25 = vector.shape_cast %24 : vector<8x32xf32> to vector<1x8x32xf32>
    %26 = vector.shape_cast %21 : vector<8x32xf32> to vector<1x8x32xf32>
    %27 = vector.extract_strided_slice %23 {offsets = [0, 0, 0], sizes = [1, 8, 8], strides = [1, 1, 1]} : vector<1x8x32xf32> to vector<1x8x8xf32>
    %28 = arith.truncf %27 : vector<1x8x8xf32> to vector<1x8x8xbf16>
    %29 = vector.extract_strided_slice %25 {offsets = [0, 0, 0], sizes = [1, 8, 8], strides = [1, 1, 1]} : vector<1x8x32xf32> to vector<1x8x8xf32>
    %30 = arith.truncf %29 : vector<1x8x8xf32> to vector<1x8x8xbf16>
    %31 = vector.extract_strided_slice %26 {offsets = [0, 0, 0], sizes = [1, 8, 8], strides = [1, 1, 1]} : vector<1x8x32xf32> to vector<1x8x8xf32>
    %32 = arith.truncf %31 : vector<1x8x8xf32> to vector<1x8x8xbf16>
    "tpu.trace_start"() <{level = 10 : i32, message = "bqd,bkd->bqk"}> : () -> ()
    %cst_12 = arith.constant dense<0.000000e+00> : vector<1x8x8xf32>
    %33 = tpu.matmul %28, %30, %cst_12 {dimension_numbers = #tpu.dot_dimension_numbers<[2], [2], [1], [1], [0, 0, 0, 1, 1, 1], [0], [0]>} : vector<1x8x8xbf16>, vector<1x8x8xbf16>, vector<1x8x8xf32> -> vector<1x8x8xf32>
    "tpu.trace_stop"() : () -> ()
    %cst_13 = arith.constant dense<0xFF800000> : vector<1x8xf32>
    %34 = vector.multi_reduction <maximumf>, %33, %cst_13 [2] : vector<1x8x8xf32> to vector<1x8xf32>
    %35 = vector.shape_cast %34 : vector<1x8xf32> to vector<1x8x1xf32>
    %36 = vector.broadcast %35 : vector<1x8x1xf32> to vector<1x8x8xf32>
    %37 = arith.subf %33, %36 : vector<1x8x8xf32>
    %38 = math.exp %37 : vector<1x8x8xf32>
    %cst_14 = arith.constant dense<0.000000e+00> : vector<1x8xf32>
    %39 = vector.multi_reduction <add>, %38, %cst_14 [2] : vector<1x8x8xf32> to vector<1x8xf32>
    %40 = vector.shape_cast %39 : vector<1x8xf32> to vector<1x8x1xf32>
    %41 = tpu.reciprocal %40 : vector<1x8x1xf32> -> vector<1x8x1xf32>
    %42 = vector.broadcast %41 : vector<1x8x1xf32> to vector<1x8x8xf32>
    %43 = arith.mulf %38, %42 : vector<1x8x8xf32>
    %44 = arith.truncf %43 : vector<1x8x8xf32> to vector<1x8x8xbf16>
    "tpu.trace_start"() <{level = 10 : i32, message = "bqk,bkd->bqd"}> : () -> ()
    %cst_15 = arith.constant dense<0.000000e+00> : vector<1x8x8xf32>
    %45 = tpu.matmul %44, %32, %cst_15 {dimension_numbers = #tpu.dot_dimension_numbers<[2], [1], [1], [2], [0, 0, 0, 1, 1, 2], [0], [0]>} : vector<1x8x8xbf16>, vector<1x8x8xbf16>, vector<1x8x8xf32> -> vector<1x8x8xf32>
    "tpu.trace_stop"() : () -> ()
    %46 = vector.shape_cast %45 : vector<1x8x8xf32> to vector<8x8xf32>
    %c0_16 = arith.constant 0 : index
    %c0_17 = arith.constant 0 : index
    %47 = vector.load %arg13[%c0_16, %c0_17] : memref<8x32xf32, #tpu.memory_space<vmem>>, vector<8x8xf32>
    tpu.vector_store %arg13[%c0_16, %c0_17], %46 {strides = array<i32>} : memref<8x32xf32, #tpu.memory_space<vmem>>, vector<8x8xf32>,
    %48 = vector.extract_strided_slice %23 {offsets = [0, 0, 8], sizes = [1, 8, 8], strides = [1, 1, 1]} : vector<1x8x32xf32> to vector<1x8x8xf32>
    %49 = arith.truncf %48 : vector<1x8x8xf32> to vector<1x8x8xbf16>
    %50 = vector.extract_strided_slice %25 {offsets = [0, 0, 8], sizes = [1, 8, 8], strides = [1, 1, 1]} : vector<1x8x32xf32> to vector<1x8x8xf32>
    %51 = arith.truncf %50 : vector<1x8x8xf32> to vector<1x8x8xbf16>
    %52 = vector.extract_strided_slice %26 {offsets = [0, 0, 8], sizes = [1, 8, 8], strides = [1, 1, 1]} : vector<1x8x32xf32> to vector<1x8x8xf32>
    %53 = arith.truncf %52 : vector<1x8x8xf32> to vector<1x8x8xbf16>
    "tpu.trace_start"() <{level = 10 : i32, message = "bqd,bkd->bqk"}> : () -> ()
    %cst_18 = arith.constant dense<0.000000e+00> : vector<1x8x8xf32>
    %54 = tpu.matmul %49, %51, %cst_18 {dimension_numbers = #tpu.dot_dimension_numbers<[2], [2], [1], [1], [0, 0, 0, 1, 1, 1], [0], [0]>} : vector<1x8x8xbf16>, vector<1x8x8xbf16>, vector<1x8x8xf32> -> vector<1x8x8xf32>
    "tpu.trace_stop"() : () -> ()
    %cst_19 = arith.constant dense<0xFF800000> : vector<1x8xf32>
    %55 = vector.multi_reduction <maximumf>, %54, %cst_19 [2] : vector<1x8x8xf32> to vector<1x8xf32>
    %56 = vector.shape_cast %55 : vector<1x8xf32> to vector<1x8x1xf32>
    %57 = vector.broadcast %56 : vector<1x8x1xf32> to vector<1x8x8xf32>
    %58 = arith.subf %54, %57 : vector<1x8x8xf32>
    %59 = math.exp %58 : vector<1x8x8xf32>
    %cst_20 = arith.constant dense<0.000000e+00> : vector<1x8xf32>
    %60 = vector.multi_reduction <add>, %59, %cst_20 [2] : vector<1x8x8xf32> to vector<1x8xf32>
    %61 = vector.shape_cast %60 : vector<1x8xf32> to vector<1x8x1xf32>
    %62 = tpu.reciprocal %61 : vector<1x8x1xf32> -> vector<1x8x1xf32>
    %63 = vector.broadcast %62 : vector<1x8x1xf32> to vector<1x8x8xf32>
    %64 = arith.mulf %59, %63 : vector<1x8x8xf32>
    %65 = arith.truncf %64 : vector<1x8x8xf32> to vector<1x8x8xbf16>
    "tpu.trace_start"() <{level = 10 : i32, message = "bqk,bkd->bqd"}> : () -> ()
    %cst_21 = arith.constant dense<0.000000e+00> : vector<1x8x8xf32>
    %66 = tpu.matmul %65, %53, %cst_21 {dimension_numbers = #tpu.dot_dimension_numbers<[2], [1], [1], [2], [0, 0, 0, 1, 1, 2], [0], [0]>} : vector<1x8x8xbf16>, vector<1x8x8xbf16>, vector<1x8x8xf32> -> vector<1x8x8xf32>
    "tpu.trace_stop"() : () -> ()
    %67 = vector.shape_cast %66 : vector<1x8x8xf32> to vector<8x8xf32>
    %c0_22 = arith.constant 0 : index
    %c8 = arith.constant 8 : index
    %68 = vector.load %arg13[%c0_22, %c8] : memref<8x32xf32, #tpu.memory_space<vmem>>, vector<8x8xf32>
    tpu.vector_store %arg13[%c0_22, %c8], %67 {strides = array<i32>} : memref<8x32xf32, #tpu.memory_space<vmem>>, vector<8x8xf32>,
    %69 = vector.extract_strided_slice %23 {offsets = [0, 0, 16], sizes = [1, 8, 8], strides = [1, 1, 1]} : vector<1x8x32xf32> to vector<1x8x8xf32>
    %70 = arith.truncf %69 : vector<1x8x8xf32> to vector<1x8x8xbf16>
    %71 = vector.extract_strided_slice %25 {offsets = [0, 0, 16], sizes = [1, 8, 8], strides = [1, 1, 1]} : vector<1x8x32xf32> to vector<1x8x8xf32>
    %72 = arith.truncf %71 : vector<1x8x8xf32> to vector<1x8x8xbf16>
    %73 = vector.extract_strided_slice %26 {offsets = [0, 0, 16], sizes = [1, 8, 8], strides = [1, 1, 1]} : vector<1x8x32xf32> to vector<1x8x8xf32>
    %74 = arith.truncf %73 : vector<1x8x8xf32> to vector<1x8x8xbf16>
    "tpu.trace_start"() <{level = 10 : i32, message = "bqd,bkd->bqk"}> : () -> ()
    %cst_23 = arith.constant dense<0.000000e+00> : vector<1x8x8xf32>
    %75 = tpu.matmul %70, %72, %cst_23 {dimension_numbers = #tpu.dot_dimension_numbers<[2], [2], [1], [1], [0, 0, 0, 1, 1, 1], [0], [0]>} : vector<1x8x8xbf16>, vector<1x8x8xbf16>, vector<1x8x8xf32> -> vector<1x8x8xf32>
    "tpu.trace_stop"() : () -> ()
    %cst_24 = arith.constant dense<0xFF800000> : vector<1x8xf32>
    %76 = vector.multi_reduction <maximumf>, %75, %cst_24 [2] : vector<1x8x8xf32> to vector<1x8xf32>
    %77 = vector.shape_cast %76 : vector<1x8xf32> to vector<1x8x1xf32>
    %78 = vector.broadcast %77 : vector<1x8x1xf32> to vector<1x8x8xf32>
    %79 = arith.subf %75, %78 : vector<1x8x8xf32>
    %80 = math.exp %79 : vector<1x8x8xf32>
    %cst_25 = arith.constant dense<0.000000e+00> : vector<1x8xf32>
    %81 = vector.multi_reduction <add>, %80, %cst_25 [2] : vector<1x8x8xf32> to vector<1x8xf32>
    %82 = vector.shape_cast %81 : vector<1x8xf32> to vector<1x8x1xf32>
    %83 = tpu.reciprocal %82 : vector<1x8x1xf32> -> vector<1x8x1xf32>
    %84 = vector.broadcast %83 : vector<1x8x1xf32> to vector<1x8x8xf32>
    %85 = arith.mulf %80, %84 : vector<1x8x8xf32>
    %86 = arith.truncf %85 : vector<1x8x8xf32> to vector<1x8x8xbf16>
    "tpu.trace_start"() <{level = 10 : i32, message = "bqk,bkd->bqd"}> : () -> ()
    %cst_26 = arith.constant dense<0.000000e+00> : vector<1x8x8xf32>
    %87 = tpu.matmul %86, %74, %cst_26 {dimension_numbers = #tpu.dot_dimension_numbers<[2], [1], [1], [2], [0, 0, 0, 1, 1, 2], [0], [0]>} : vector<1x8x8xbf16>, vector<1x8x8xbf16>, vector<1x8x8xf32> -> vector<1x8x8xf32>
    "tpu.trace_stop"() : () -> ()
    %88 = vector.shape_cast %87 : vector<1x8x8xf32> to vector<8x8xf32>
    %c0_27 = arith.constant 0 : index
    %c16 = arith.constant 16 : index
    %89 = vector.load %arg13[%c0_27, %c16] : memref<8x32xf32, #tpu.memory_space<vmem>>, vector<8x8xf32>
    tpu.vector_store %arg13[%c0_27, %c16], %88 {strides = array<i32>} : memref<8x32xf32, #tpu.memory_space<vmem>>, vector<8x8xf32>,
    %90 = vector.extract_strided_slice %23 {offsets = [0, 0, 24], sizes = [1, 8, 8], strides = [1, 1, 1]} : vector<1x8x32xf32> to vector<1x8x8xf32>
    %91 = arith.truncf %90 : vector<1x8x8xf32> to vector<1x8x8xbf16>
    %92 = vector.extract_strided_slice %25 {offsets = [0, 0, 24], sizes = [1, 8, 8], strides = [1, 1, 1]} : vector<1x8x32xf32> to vector<1x8x8xf32>
    %93 = arith.truncf %92 : vector<1x8x8xf32> to vector<1x8x8xbf16>
    %94 = vector.extract_strided_slice %26 {offsets = [0, 0, 24], sizes = [1, 8, 8], strides = [1, 1, 1]} : vector<1x8x32xf32> to vector<1x8x8xf32>
    %95 = arith.truncf %94 : vector<1x8x8xf32> to vector<1x8x8xbf16>
    "tpu.trace_start"() <{level = 10 : i32, message = "bqd,bkd->bqk"}> : () -> ()
    %cst_28 = arith.constant dense<0.000000e+00> : vector<1x8x8xf32>
    %96 = tpu.matmul %91, %93, %cst_28 {dimension_numbers = #tpu.dot_dimension_numbers<[2], [2], [1], [1], [0, 0, 0, 1, 1, 1], [0], [0]>} : vector<1x8x8xbf16>, vector<1x8x8xbf16>, vector<1x8x8xf32> -> vector<1x8x8xf32>
    "tpu.trace_stop"() : () -> ()
    %cst_29 = arith.constant dense<0xFF800000> : vector<1x8xf32>
    %97 = vector.multi_reduction <maximumf>, %96, %cst_29 [2] : vector<1x8x8xf32> to vector<1x8xf32>
    %98 = vector.shape_cast %97 : vector<1x8xf32> to vector<1x8x1xf32>
    %99 = vector.broadcast %98 : vector<1x8x1xf32> to vector<1x8x8xf32>
    %100 = arith.subf %96, %99 : vector<1x8x8xf32>
    %101 = math.exp %100 : vector<1x8x8xf32>
    %cst_30 = arith.constant dense<0.000000e+00> : vector<1x8xf32>
    %102 = vector.multi_reduction <add>, %101, %cst_30 [2] : vector<1x8x8xf32> to vector<1x8xf32>
    %103 = vector.shape_cast %102 : vector<1x8xf32> to vector<1x8x1xf32>
    %104 = tpu.reciprocal %103 : vector<1x8x1xf32> -> vector<1x8x1xf32>
    %105 = vector.broadcast %104 : vector<1x8x1xf32> to vector<1x8x8xf32>
    %106 = arith.mulf %101, %105 : vector<1x8x8xf32>
    %107 = arith.truncf %106 : vector<1x8x8xf32> to vector<1x8x8xbf16>
    "tpu.trace_start"() <{level = 10 : i32, message = "bqk,bkd->bqd"}> : () -> ()
    %cst_31 = arith.constant dense<0.000000e+00> : vector<1x8x8xf32>
    %108 = tpu.matmul %107, %95, %cst_31 {dimension_numbers = #tpu.dot_dimension_numbers<[2], [1], [1], [2], [0, 0, 0, 1, 1, 2], [0], [0]>} : vector<1x8x8xbf16>, vector<1x8x8xbf16>, vector<1x8x8xf32> -> vector<1x8x8xf32>
    "tpu.trace_stop"() : () -> ()
    %109 = vector.shape_cast %108 : vector<1x8x8xf32> to vector<8x8xf32>
    %c0_32 = arith.constant 0 : index
    %c24 = arith.constant 24 : index
    %110 = vector.load %arg13[%c0_32, %c24] : memref<8x32xf32, #tpu.memory_space<vmem>>, vector<8x8xf32>
    tpu.vector_store %arg13[%c0_32, %c24], %109 {strides = array<i32>} : memref<8x32xf32, #tpu.memory_space<vmem>>, vector<8x8xf32>,
    %111 = vector.shape_cast %43 : vector<1x8x8xf32> to vector<1x1x8x8xf32>
    %112 = vector.shape_cast %64 : vector<1x8x8xf32> to vector<1x1x8x8xf32>
    %113 = vector.shape_cast %85 : vector<1x8x8xf32> to vector<1x1x8x8xf32>
    %114 = vector.shape_cast %106 : vector<1x8x8xf32> to vector<1x1x8x8xf32>
    %115 = tpu.concatenate %111, %112, %113, %114 in 1 : vector<1x1x8x8xf32>, vector<1x1x8x8xf32>, vector<1x1x8x8xf32>, vector<1x1x8x8xf32> -> vector<1x4x8x8xf32>
    %c0_33 = arith.constant 0 : index
    %c0_34 = arith.constant 0 : index
    %c0_35 = arith.constant 0 : index
    %c0_36 = arith.constant 0 : index
    %116 = vector.load %arg12[%c0_33, %c0_34, %c0_35, %c0_36] : memref<1x4x8x8xf32, #tpu.memory_space<vmem>>, vector<1x4x8x8xf32>
    tpu.vector_store %arg12[%c0_33, %c0_34, %c0_35, %c0_36], %115 {strides = array<i32>} : memref<1x4x8x8xf32, #tpu.memory_space<vmem>>, vector<1x4x8x8xf32>,
    %c0_37 = arith.constant 0 : index
    %c0_38 = arith.constant 0 : index
    %117 = vector.load %arg13[%c0_37, %c0_38] : memref<8x32xf32, #tpu.memory_space<vmem>>, vector<8x32xf32>
    %118 = arith.truncf %117 : vector<8x32xf32> to vector<8x32xbf16>
    %c0_39 = arith.constant 0 : index
    %c0_40 = arith.constant 0 : index
    %119 = vector.load %arg6[%c0_39, %c0_40] : memref<32x32xbf16, #tpu.memory_space<vmem>>, vector<32x32xbf16>
    %cst_41 = arith.constant dense<0.000000e+00> : vector<8x32xf32>
    %120 = tpu.matmul %118, %119, %cst_41 {dimension_numbers = #tpu.dot_dimension_numbers<[1], [0], [0], [1], [0, 0, 1, 1], [], []>} : vector<8x32xbf16>, vector<32x32xbf16>, vector<8x32xf32> -> vector<8x32xf32>
    %121 = vector.broadcast %2 : vector<1x32xf32> to vector<8x32xf32>
    %122 = arith.addf %120, %121 : vector<8x32xf32>
    %123 = arith.addf %8, %122 : vector<8x32xf32>
    %cst_42 = arith.constant dense<0.000000e+00> : vector<8xf32>
    %124 = vector.multi_reduction <add>, %123, %cst_42 [1] : vector<8x32xf32> to vector<8xf32>
    %125 = vector.shape_cast %124 : vector<8xf32> to vector<8x1xf32>
    %cst_43 = arith.constant 3.200000e+01 : f32
    %126 = vector.broadcast %cst_43 : f32 to vector<8x1xf32>
    %127 = arith.divf %125, %126 : vector<8x1xf32>
    %128 = vector.broadcast %127 : vector<8x1xf32> to vector<8x32xf32>
    %129 = arith.subf %123, %128 : vector<8x32xf32>
    %130 = arith.mulf %129, %129 : vector<8x32xf32>
    %cst_44 = arith.constant dense<0.000000e+00> : vector<8xf32>
    %131 = vector.multi_reduction <add>, %130, %cst_44 [1] : vector<8x32xf32> to vector<8xf32>
    %132 = vector.shape_cast %131 : vector<8xf32> to vector<8x1xf32>
    %cst_45 = arith.constant 3.200000e+01 : f32
    %133 = vector.broadcast %cst_45 : f32 to vector<8x1xf32>
    %134 = arith.divf %132, %133 : vector<8x1xf32>
    %135 = vector.broadcast %127 : vector<8x1xf32> to vector<8x32xf32>
    %136 = arith.subf %123, %135 : vector<8x32xf32>
    %cst_46 = arith.constant 9.99999974E-6 : f32
    %137 = vector.broadcast %cst_46 : f32 to vector<8x1xf32>
    %138 = arith.addf %134, %137 : vector<8x1xf32>
    %139 = math.rsqrt %138 : vector<8x1xf32>
    %140 = vector.broadcast %139 : vector<8x1xf32> to vector<8x32xf32>
    %141 = arith.mulf %136, %140 : vector<8x32xf32>
    %142 = vector.broadcast %4 : vector<1x32xf32> to vector<8x32xf32>
    %143 = arith.mulf %141, %142 : vector<8x32xf32>
    %144 = vector.broadcast %5 : vector<1x32xf32> to vector<8x32xf32>
    %145 = arith.addf %143, %144 : vector<8x32xf32>
    %146 = arith.truncf %145 : vector<8x32xf32> to vector<8x32xbf16>
    %c0_47 = arith.constant 0 : index
    %c0_48 = arith.constant 0 : index
    %147 = vector.load %arg7[%c0_47, %c0_48] : memref<32x128xbf16, #tpu.memory_space<vmem>>, vector<32x128xbf16>
    %cst_49 = arith.constant dense<0.000000e+00> : vector<8x128xf32>
    %148 = tpu.matmul %146, %147, %cst_49 {dimension_numbers = #tpu.dot_dimension_numbers<[1], [0], [0], [1], [0, 0, 1, 1], [], []>} : vector<8x32xbf16>, vector<32x128xbf16>, vector<8x128xf32> -> vector<8x128xf32>
    %c0_50 = arith.constant 0 : index
    %c0_51 = arith.constant 0 : index
    %149 = vector.load %arg8[%c0_50, %c0_51] : memref<1x128xf32, #tpu.memory_space<vmem>>, vector<1x128xf32>
    %150 = vector.broadcast %149 : vector<1x128xf32> to vector<8x128xf32>
    %151 = arith.addf %148, %150 : vector<8x128xf32>
    %cst_52 = arith.constant 0.000000e+00 : f32
    %152 = vector.broadcast %cst_52 : f32 to vector<8x128xf32>
    %153 = arith.maximumf %151, %152 : vector<8x128xf32>
    %154 = arith.truncf %153 : vector<8x128xf32> to vector<8x128xbf16>
    %c0_53 = arith.constant 0 : index
    %c0_54 = arith.constant 0 : index
    %155 = vector.load %arg9[%c0_53, %c0_54] : memref<128x32xbf16, #tpu.memory_space<vmem>>, vector<128x32xbf16>
    %cst_55 = arith.constant dense<0.000000e+00> : vector<8x32xf32>
    %156 = tpu.matmul %154, %155, %cst_55 {dimension_numbers = #tpu.dot_dimension_numbers<[1], [0], [0], [1], [0, 0, 1, 1], [], []>} : vector<8x128xbf16>, vector<128x32xbf16>, vector<8x32xf32> -> vector<8x32xf32>
    %157 = vector.broadcast %3 : vector<1x32xf32> to vector<8x32xf32>
    %158 = arith.addf %156, %157 : vector<8x32xf32>
    %159 = arith.addf %123, %158 : vector<8x32xf32>
    %cst_56 = arith.constant dense<0.000000e+00> : vector<8xf32>
    %160 = vector.multi_reduction <add>, %159, %cst_56 [1] : vector<8x32xf32> to vector<8xf32>
    %161 = vector.shape_cast %160 : vector<8xf32> to vector<8x1xf32>
    %cst_57 = arith.constant 3.200000e+01 : f32
    %162 = vector.broadcast %cst_57 : f32 to vector<8x1xf32>
    %163 = arith.divf %161, %162 : vector<8x1xf32>
    %164 = vector.broadcast %163 : vector<8x1xf32> to vector<8x32xf32>
    %165 = arith.subf %159, %164 : vector<8x32xf32>
    %166 = arith.mulf %165, %165 : vector<8x32xf32>
    %cst_58 = arith.constant dense<0.000000e+00> : vector<8xf32>
    %167 = vector.multi_reduction <add>, %166, %cst_58 [1] : vector<8x32xf32> to vector<8xf32>
    %168 = vector.shape_cast %167 : vector<8xf32> to vector<8x1xf32>
    %cst_59 = arith.constant 3.200000e+01 : f32
    %169 = vector.broadcast %cst_59 : f32 to vector<8x1xf32>
    %170 = arith.divf %168, %169 : vector<8x1xf32>
    %171 = vector.broadcast %163 : vector<8x1xf32> to vector<8x32xf32>
    %172 = arith.subf %159, %171 : vector<8x32xf32>
    %cst_60 = arith.constant 9.99999974E-6 : f32
    %173 = vector.broadcast %cst_60 : f32 to vector<8x1xf32>
    %174 = arith.addf %170, %173 : vector<8x1xf32>
    %175 = math.rsqrt %174 : vector<8x1xf32>
    %176 = vector.broadcast %175 : vector<8x1xf32> to vector<8x32xf32>
    %177 = arith.mulf %172, %176 : vector<8x32xf32>
    %178 = vector.broadcast %6 : vector<1x32xf32> to vector<8x32xf32>
    %179 = arith.mulf %177, %178 : vector<8x32xf32>
    %180 = vector.broadcast %7 : vector<1x32xf32> to vector<8x32xf32>
    %181 = arith.addf %179, %180 : vector<8x32xf32>
    %c0_61 = arith.constant 0 : index
    %c0_62 = arith.constant 0 : index
    %182 = vector.load %arg11[%c0_61, %c0_62] : memref<8x32xf32, #tpu.memory_space<vmem>>, vector<8x32xf32>
    tpu.vector_store %arg11[%c0_61, %c0_62], %181 {strides = array<i32>} : memref<8x32xf32, #tpu.memory_space<vmem>>, vector<8x32xf32>,
    return
  }
  func.func @transform_0(%arg0: i32) -> (i32, i32) {
    %c0_i32 = arith.constant 0 : i32
    %c0_i32_0 = arith.constant 0 : i32
    return %arg0, %c0_i32 : i32, i32
  }
  func.func @transform_1(%arg0: i32) -> (i32, i32) {
    %c0_i32 = arith.constant 0 : i32
    %c0_i32_0 = arith.constant 0 : i32
    %c0_i32_1 = arith.constant 0 : i32
    return %c0_i32, %c0_i32_0 : i32, i32
  }
  func.func @transform_2(%arg0: i32) -> (i32, i32) {
    %c0_i32 = arith.constant 0 : i32
    %c0_i32_0 = arith.constant 0 : i32
    %c0_i32_1 = arith.constant 0 : i32
    return %c0_i32, %c0_i32_0 : i32, i32
  }
  func.func @transform_3(%arg0: i32) -> (i32, i32) {
    %c0_i32 = arith.constant 0 : i32
    %c0_i32_0 = arith.constant 0 : i32
    %c0_i32_1 = arith.constant 0 : i32
    return %c0_i32, %c0_i32_0 : i32, i32
  }
  func.func @transform_4(%arg0: i32) -> (i32, i32) {
    %c0_i32 = arith.constant 0 : i32
    %c0_i32_0 = arith.constant 0 : i32
    %c0_i32_1 = arith.constant 0 : i32
    return %c0_i32, %c0_i32_0 : i32, i32
  }
  func.func @transform_5(%arg0: i32) -> (i32, i32) {
    %c0_i32 = arith.constant 0 : i32
    %c0_i32_0 = arith.constant 0 : i32
    %c0_i32_1 = arith.constant 0 : i32
    return %c0_i32, %c0_i32_0 : i32, i32
  }
  func.func @transform_6(%arg0: i32) -> (i32, i32) {
    %c0_i32 = arith.constant 0 : i32
    %c0_i32_0 = arith.constant 0 : i32
    %c0_i32_1 = arith.constant 0 : i32
    return %c0_i32, %c0_i32_0 : i32, i32
  }
  func.func @transform_7(%arg0: i32) -> (i32, i32) {
    %c0_i32 = arith.constant 0 : i32
    %c0_i32_0 = arith.constant 0 : i32
    %c0_i32_1 = arith.constant 0 : i32
    return %c0_i32, %c0_i32_0 : i32, i32
  }
  func.func @transform_8(%arg0: i32) -> (i32, i32) {
    %c0_i32 = arith.constant 0 : i32
    %c0_i32_0 = arith.constant 0 : i32
    %c0_i32_1 = arith.constant 0 : i32
    return %c0_i32, %c0_i32_0 : i32, i32
  }
  func.func @transform_9(%arg0: i32) -> (i32, i32) {
    %c0_i32 = arith.constant 0 : i32
    %c0_i32_0 = arith.constant 0 : i32
    %c0_i32_1 = arith.constant 0 : i32
    return %c0_i32, %c0_i32_0 : i32, i32
  }
  func.func @transform_10(%arg0: i32) -> (i32, i32) {
    %c0_i32 = arith.constant 0 : i32
    %c0_i32_0 = arith.constant 0 : i32
    return %arg0, %c0_i32 : i32, i32
  }
  func.func @transform_11(%arg0: i32) -> (i32, i32, i32, i32) {
    %c0_i32 = arith.constant 0 : i32
    %c0_i32_0 = arith.constant 0 : i32
    %c0_i32_1 = arith.constant 0 : i32
    %c0_i32_2 = arith.constant 0 : i32
    return %arg0, %c0_i32, %c0_i32_0, %c0_i32_1 : i32, i32, i32, i32
  }
}

</mosaic_0001>

<bundles_post_ra>
// kernel: tpu_custom_call.1
= control target key start
LH: loop header
LB: loop body
LE: loop exit
PB: predicated region body
PF: predicated region fallthrough
CT: control target
= control target key end

     0   :  { %s1966_s0 = inlined_call_operand.vmem [shape: f32[16,32], index: 0, kind: input, shape index: {}]   ;;  %s1967_s1 = inlined_call_operand.hbm [shape: f32[8,32], index: 1, kind: input, shape index: {}]   ;;  %s1968_s2 = inlined_call_operand.vmem [shape: bf16[32,64], index: 2, kind: input, shape index: {}]   ;;  %s1969_s3 = inlined_call_operand.hbm [shape: f32[1,64], index: 3, kind: input, shape index: {}]   ;;  %s1970_s4 = inlined_call_operand.vmem [shape: bf16[32,32], index: 4, kind: input, shape index: {}]   ;;  %s1971_s5 = inlined_call_operand.vmem [shape: bf16[32,32], index: 5, kind: input, shape index: {}]   ;;  %s1972_s6 = inlined_call_operand.vmem [shape: bf16[32,128], index: 6, kind: input, shape index: {}]   ;;  %s1973_s7 = inlined_call_operand.hbm [shape: f32[1,128], index: 7, kind: input, shape index: {}]   ;;  %s1974_s8 = inlined_call_operand.vmem [shape: bf16[128,32], index: 8, kind: input, shape index: {}]   ;;  %s1975_s9 = inlined_call_operand.vmem [shape: f32[8,32], index: 9, kind: input, shape index: {}]   ;;  %s1976_s10 = inlined_call_operand.hbm [shape: f32[16,32], index: 10, kind: output, shape index: {0}]   ;;  %s1977_s11 = inlined_call_operand.hbm [shape: f32[2,4,8,8], index: 11, kind: output, shape index: {1}]  }
   0x1   :  { %1980 = sst [smem:[#allocation18_spill]] %s1966_s0 }
   0x2   :  { %1981 = sst [smem:[#allocation19_spill]] %s1967_s1 }
   0x3   :  { %1982 = sst [smem:[#allocation20_spill]] %s1968_s2 }
   0x4   :  { %1983 = sst [smem:[#allocation21_spill]] %s1969_s3 }
   0x5   :  { %17 = vsyncpa [#allocation4], 0 }
   0x6   :  { %18 = vsyncpa [#allocation7], 0 }
   0x7   :  { %19 = vsyncpa [#allocation5], 0 }
   0x8   :  { %21 = vsyncpa [#allocation5 + $0x1], 0 }
   0x9   :  { %22 = vsyncpa [#allocation11], 0 }
   0xa   :  { %24 = vsyncpa [#allocation11 + $0x1], 0  ;;  %s1687_s17 = smov 0   ;;  %s1689_s18 = smov 0  }
   0xb   :  { %s1691_s19 = smov 0   ;;  %s1693_s20 = smov 0  }
   0xc LB: > { %1984 = sst [smem:[#allocation16_spill]] %s1606_s19  ;;  %s1708_s21 = sadd.s32 4294967295, %s1610_s20   ;;  %s1610_s20 = sphi %s1693_s20, %s1998_s20   ;;  %s1606_s19 = sphi %s1691_s19, %s1995_s19   ;;  %s1602_s18 = sphi %s1689_s18, %s1997_s18   ;;  %s1598_s17 = sphi %s1687_s17, %s1996_s17  }
   0xd   : > { %s1194_s22 = sadd.s32 4294967294, %s1610_s20   ;;  %s1712_s23 = sadd.s32 1, %s1610_s20  }
   0xe   : > { %s252_s24 = sadd.s32 1, %s1606_s19  ;;  %s249_s25 = ssub.s32 %s1610_s20, %s1712_s23 }
   0xf   : > { %p262_p0 = scmp.ne.s32.totalorder %s1606_s19, %s1602_s18  ;;  %p250_p1 = scmp.eq.s32.totalorder %s249_s25, 0 }
  0x10   : > { %p263_p2 = scmp.eq.s32.totalorder %s1708_s21, 1  ;;  %p268_p3 = scmp.ne.s32.totalorder %s1602_s18, %s1598_s17 }
  0x11   : > { %p269_p4 = scmp.eq.s32.totalorder %s1194_s22, 1  ;;  %p1195_p7 = scmp.ge.s32.totalorder %s1610_s20, 1 }
  0x12   : > { %s1723_s26 = scalar_select %p250_p1, %s1606_s19, %s252_s24  }
  0x13   : > { %p1725_p5 = por %p263_p2, %p262_p0  ;;  %p1729_p6 = por %p269_p4, %p268_p3 }
  0x14   : > { %1985 = sst [smem:[#allocation17_spill]] %s1723_s26  ;;  %p302_p8 = scmp.lt.s32.totalorder %s1610_s20, 3 }
  0x15   : > { %p1340_p9 = scmp.eq.s32.totalorder %s1708_s21, 0  ;;  %s1989_s3 = sld [smem:[#allocation21_spill]] }
  0x16   : > { %p1736_p10 = pnand %p1195_p7, %p302_p8  ;;  %s1612_s14 = smov [#allocation6]  }
  0x17   : > { %s331_s15 = sshll.u32 %s1612_s14, 4  ;;  %s1990_s1 = sld [smem:[#allocation19_spill]]  ;;  %s332_s15 = int_to_ptr.vmem [resolvable:$true] %s331_s15 }
  0x18   : > { %p1323_p11 = pneg %p1736_p10  ;;  %s350_s19 = sshll.u32 %s1973_s7, 4  ;;  %s351_s19 = int_to_ptr.hbm [resolvable:$true] %s350_s19 }
  0x19   : > { %s1613_s30 = smov [#allocation3]  }
  0x1a   : > { %p1324_p12 = pnand %p1340_p9, %p1323_p11  ;;  %s316_s12 = sshll.u32 %s1613_s30, 4  ;;  %s317_s12 = int_to_ptr.vmem [resolvable:$true] %s316_s12 }
  0x1b   : > { %s329_s13 = sshll.u32 %s1989_s3, 4  ;;  %s1614_s3 = smov [#allocation8]   ;;  %s330_s13 = int_to_ptr.hbm [resolvable:$true] %s329_s13 }
  0x1c   : > { %1329 = dma.hbm_to_vmem [thread:$0]  (!%p1324_p12), %s330_s13, 16, %s332_s15, [#allocation7]  }
  0x1d   : > { %s314_s24 = sshll.u32 %s1990_s1, 4  ;;  %s352_s14 = sshll.u32 %s1614_s3, 4  ;;  %s315_s24 = int_to_ptr.hbm [resolvable:$true] %s314_s24  ;;  %s353_s14 = int_to_ptr.vmem [resolvable:$true] %s352_s14 }
  0x1e   : > { %1326 = dma.hbm_to_vmem [thread:$0]  (!%p1324_p12), %s315_s24, 128, %s317_s12, [#allocation4]  }
  0x1f   : > { %1332 = dma.hbm_to_vmem [thread:$0]  (!%p1324_p12), %s351_s19, 16, %s353_s14, [#allocation7]  }
  0x20   : > { %378 = sbr.rel (%p1736_p10) target bundleno = 1939 (0x793), region = 60 }
  0x25   : > { %1581 = dma.done.wait (%p1340_p9), [#allocation4], 128  }
  0x26   : > { %1583 = vsyncadd (%p1340_p9), [#allocation4], 4294967168 }
  0x27   : > { %1585 = dma.done.wait (%p1340_p9), [#allocation7], 32  }
  0x28   : > { %1587 = vsyncadd (%p1340_p9), [#allocation7], 4294967264  ;;  %p433_p13 = scmp.lt.s32.totalorder %s1708_s21, 1  ;;  %s1991_s0 = sld [smem:[#allocation18_spill]]  ;;  %v440_v2 = vld [vmem:[#allocation3] sm:$0xff]  ;;  %vm463_vm0 = vcmask 261120  }
  0x29   : > { %s1992_s2 = sld [smem:[#allocation20_spill]]  ;;  %v1394_v6 = vld [vmem:[#allocation6] ss:$0 sm:$0xff]  ;;  %s1615_s25 = smov 72   ;;  %v1293_v13 = vld [vmem:[%s1970_s4 + $0x8] sm:$0xff]  ;;  %v1292_v14 = vld [vmem:[%s1970_s4] sm:$0xff] }
  0x2a   : > { %s434_s3 = scalar_select %p433_p13, %s1708_s21, 1  ;;  %507 = vmatpush.bf16.msra.mxu1 %v1293_v13  ;;  %vm521_vm1 = vcmask 64512   ;;  %v1801_v29 = vld [vmem:[%s1975_s9] sm:$0xff]  ;;  %vm569_vm2 = vcmask 1043456  }
  0x2b   : > { %s1616_s30 = smov 120   ;;  %s1617_s12 = smov 96   ;;  %v485_v30 = vperm.slane %v1801_v29, 0 }
  0x2c   : > { %s1206_s19 = sshll.u32 %s434_s3, 3  ;;  %s1618_s14 = smov 112  }
  0x2d   : > { %s1619_s3 = smov 80   ;;  %s1621_s26 = smov 104  }
  0x2e   : > { %s436_s13 = scalar_lea.vmem %s1991_s0, %s1206_s19  ;;  %s1620_s19 = smov 88   ;;  %508 = vmatpush.bf16.msra.mxu1 %v1292_v14 }
  0x2f   : > { %v1291_v0 = vld [vmem:[%s1992_s2 + $0x8] sm:$0xff]  ;;  %v1771_v1 = vld [vmem:[%s436_s13] sm:$0xff]  ;;  %s1306_s16 = sshll.u32 %s1708_s21, 5  ;;  %s1528_s0 = scalar_lea.hbm %s1977_s11, 64 }
  0x30   : > { %473 = vmatpush.bf16.msra.mxu0 %v1291_v0  ;;  %v1290_v3 = vld [vmem:[%s1992_s2] sm:$0xff]  ;;  %v441_v4 = vadd.f32 %v440_v2, %v1771_v1  ;;  %v480_v15 = vpack.c.bf16 %v1771_v1, %v1771_v1 }
  0x32   : > { %v442_v5 = vpack.c.bf16 %v441_v4, %v441_v4  ;;  %1224 = vmatmul.msk.bf16.vlgmr.msra.gmra.mxu1 %vm463_vm0, %v480_v15 }
  0x34   : > { %474 = vmatpush.bf16.msra.mxu0 %v1290_v3 }
  0x37   : > { %1215 = vmatmul.msk.bf16.vlgmr.msra.gmra.mxu0 %vm463_vm0, %v442_v5 }
  0xaf   : > { %v510_v27 = vpop.f32.mrf.mxu1 }
  0xb0   : > { %v511_v31 = vadd.f32 %v510_v27, %v485_v30 }
  0xb2   : > { %v515_v32 = vpack.c.bf16 %v511_v31, %v511_v31 }
  0xb4   : > { %v476_v7 = vpop.f32.mrf.mxu0  ;;  %v571_v36 = vsel %vm569_vm2, %v515_v32, 0  ;;  %v636_v0 = vunpack.c.l.b16 %v515_v32 }
  0xb5   : > { %v477_v8 = vadd.f32 %v1394_v6, %v476_v7  ;;  %580 = vmatpush.bf16.msrb.mxu0 %v571_v36 }
  0xb6   : > { %v637_v2 = vpack.c.b16 %v636_v0, %v636_v0 }
  0xb7   : > { %v514_v9 = vpack.c.bf16 %v477_v8, %v477_v8  ;;  %v512_v28 = vpop.f32.mrf.mxu1 }
  0xb9   : > { %v517_v10 = vunpack.c.l.b16 %v514_v9 }
  0xbb   : > { %v518_v11 = vpack.c.b16 %v517_v10, %v517_v10 }
  0xbc   : > { %v478_v12 = vpop.f32.mrf.mxu0 }
  0xbd   : > { %742 = vrot.lane.b32.xlu2 %v518_v11, %s1615_s25  ;;  %587 = vrot.lane.b32.xlu1 %v518_v11, %s1616_s30  ;;  %s1829_s25 = sand.u32 1, %s1602_s18  }
  0xbe   : > { %519 = vrot.lane.b32.xlu0 %v518_v11, %s1617_s12 }
  0xc5   : > { %665 = vrot.lane.b32.xlu2 %v518_v11, %s1618_s14  ;;  %667 = vrot.lane.b32.xlu1 %v518_v11, %s1619_s3  ;;  %s1979_s3 = smov 8  }
  0xc6   : > { %589 = vrot.lane.b32.xlu0 %v518_v11, %s1620_s19  ;;  %s1624_s19 = smov 24  }
  0xce   : > { %740 = vrot.lane.b32.xlu0 %v518_v11, %s1621_s26 }
 0x117   : > { %v743_v19 = vpop.permute.xlu2 %742 }
 0x118   : > { %v748_v24 = vsel %vm521_vm1, %v743_v19, 0 }
 0x11f   : > { %v666_v25 = vpop.permute.xlu2 %665 }
 0x12f   : > { %v588_v16 = vpop.permute.xlu1 %587 }
 0x130   : > { %v520_v17 = vpop.permute.xlu0 %519 }
 0x131   : > { %v526_v18 = vsel %vm521_vm1, %v520_v17, 0 }
 0x132   : > { %535 = vmatpush.bf16.xpose.msra.mxu2 %v526_v18 }
 0x137   : > { %v668_v20 = vpop.permute.xlu1 %667 }
 0x138   : > { %v590_v21 = vpop.permute.xlu0 %589  ;;  %v673_v22 = vsel %vm521_vm1, %v668_v20, 0 }
 0x139   : > { %1225 = vmatmul.msk.bf16.vlgmr.msra.gmra.mxu2 %vm521_vm1, %v514_v9  ;;  %v595_v23 = vsel %vm521_vm1, %v590_v21, 0  ;;  %682 = vmatpush.bf16.xpose.msrb.mxu1 %v673_v22 }
 0x13a   : > { %604 = vmatpush.bf16.xpose.msra.mxu3 %v595_v23 }
 0x140   : > { %1229 = vmatmul.msk.bf16.vlgmr.msrb.gmra.mxu1 %vm521_vm1, %v666_v25  ;;  %v741_v26 = vpop.permute.xlu0 %740 }
 0x141   : > { %1227 = vmatmul.msk.bf16.vlgmr.msra.gmra.mxu3 %vm521_vm1, %v588_v16 }
 0x142   : > { %757 = vmatpush.bf16.xpose.msrb.mxu3 %v748_v24 }
 0x151   : > { %1231 = vmatmul.msk.bf16.vlgmr.msrb.gmra.mxu3 %vm521_vm1, %v741_v26 }
 0x1bc   : > { %v537_v33 = vpop.f32.mrf.mxu2 }
 0x1bd   : > { %v684_v34 = vpop.f32.mrf.mxu1  ;;  %v541_v35 = vsel %vm521_vm1, %v537_v33, -inf }
 0x1be   : > { %542 = vmax.xlane.f32.xlu1 %v541_v35  ;;  %v688_v37 = vsel %vm521_vm1, %v684_v34, -inf }
 0x1bf   : > { %689 = vmax.xlane.f32.xlu0 %v688_v37 }
 0x1c4   : > { %v539_v38 = vpop.f32.mrf.mxu2  ;;  %v606_v39 = vpop.f32.mrf.mxu3 }
 0x1c5   : > { %v686_v40 = vpop.f32.mrf.mxu1  ;;  %v610_v41 = vsel %vm521_vm1, %v606_v39, -inf }
 0x1c6   : > { %611 = vmax.xlane.f32.xlu2 %v610_v41 }
 0x1cc   : > { %v608_v42 = vpop.f32.mrf.mxu3 }
 0x1d4   : > { %v759_v43 = vpop.f32.mrf.mxu3 }
 0x1d5   : > { %v763_v44 = vsel %vm521_vm1, %v759_v43, -inf }
 0x1d6   : > { %764 = vmax.xlane.f32.xlu2 %v763_v44 }
 0x1dc   : > { %v761_v45 = vpop.f32.mrf.mxu3 }
 0x231   : > { %v543_v46 = vpop.xlane.xlu1 %542 }
 0x232   : > { %v544_v47 = vsub.f32 %v537_v33, %v543_v46  ;;  %v690_v48 = vpop.xlane.xlu0 %689 }
 0x233   : > { %v691_v49 = vsub.f32 %v684_v34, %v690_v48 }
 0x234   : > { %v545_v50 = vmul.f32 1.442695, %v544_v47 }
 0x235   : > { %v692_v51 = vmul.f32 1.442695, %v691_v49 }
 0x236   : > { %1396 = vpow2.f32 %v545_v50 }
 0x237   : > { %1398 = vpow2.f32 %v692_v51 }
 0x239   : > { %v612_v52 = vpop.xlane.xlu2 %611 }
 0x23a   : > { %v613_v53 = vsub.f32 %v606_v39, %v612_v52 }
 0x23c   : > { %v1809_v54 = vpop.eup %1396  ;;  %v614_v55 = vmul.f32 1.442695, %v613_v53 }
 0x23d   : > { %v1811_v56 = vpop.eup %1398  ;;  %v547_v57 = vsel %vm521_vm1, %v1809_v54, 0.0 }
 0x23e   : > { %1400 = vpow2.f32 %v614_v55  ;;  %548 = vadd.xlane.f32.xlu1 %v547_v57  ;;  %v694_v58 = vsel %vm521_vm1, %v1811_v56, 0.0 }
 0x23f   : > { %695 = vadd.xlane.f32.xlu0 %v694_v58 }
 0x244   : > { %v1817_v59 = vpop.eup %1400 }
 0x245   : > { %v616_v60 = vsel %vm521_vm1, %v1817_v59, 0.0 }
 0x246   : > { %617 = vadd.xlane.f32.xlu2 %v616_v60 }
 0x249   : > { %v765_v61 = vpop.xlane.xlu2 %764 }
 0x24a   : > { %v766_v62 = vsub.f32 %v759_v43, %v765_v61 }
 0x24c   : > { %v767_v63 = vmul.f32 1.442695, %v766_v62 }
 0x24e   : > { %1402 = vpow2.f32 %v767_v63 }
 0x253   : > { %713 = vrot.lane.b32.xlu0 %v637_v2, %s1618_s14  ;;  %s1622_s14 = smov 16  }
 0x254   : > { %v1822_v3 = vpop.eup %1402 }
 0x255   : > { %v769_v4 = vsel %vm521_vm1, %v1822_v3, 0.0 }
 0x256   : > { %770 = vadd.xlane.f32.xlu1 %v769_v4 }
 0x25e   : > { %638 = vrot.lane.b32.xlu2 %v637_v2, %s1616_s30  ;;  %s1205_s30 = sshll.u32 %s1829_s25, 5 }
 0x25f   : > { %s1835_s12 = scalar_lea.vmem [#allocation10], %s1205_s30  ;;  %s1064_s30 = scalar_lea.hbm %s1977_s11, %s1306_s16 }
 0x26f   : > { %788 = vrot.lane.b32.xlu1 %v637_v2, %s1621_s26  ;;  %s1039_s26 = scalar_lea.sflag [#allocation11], %s1829_s25 }
 0x2b1   : > { %v549_v5 = vpop.xlane.xlu1 %548 }
 0x2b2   : > { %1404 = vrcp.f32 %v549_v5  ;;  %v696_v6 = vpop.xlane.xlu0 %695  ;;  %v561_v13 = vand.u32 2147483648, %v549_v5  ;;  %v559_v16 = vand.u32 2147483647, %v549_v5  ;;  %vm555_vm5 = vweird.f32 %v549_v5 }
 0x2b3   : > { %1406 = vrcp.f32 %v696_v6  ;;  %v708_v17 = vand.u32 2147483648, %v696_v6  ;;  %v706_v19 = vand.u32 2147483647, %v696_v6  ;;  %vm702_vm7 = vweird.f32 %v696_v6 }
 0x2b4   : > { %v562_v22 = vor.u32 1.1754944e-38, %v561_v13  ;;  %vm560_vm8 = vcmp.eq.f32.partialorder %v559_v16, 8.507059e+37  ;;  %v825_v16 = vperm.slane %v1801_v29, 1 }
 0x2b5   : > { %v709_v25 = vor.u32 1.1754944e-38, %v708_v17  ;;  %vm707_vm10 = vcmp.eq.f32.partialorder %v706_v19, 8.507059e+37 }
 0x2b8   : > { %v1405_v7 = vpop.eup %1404 }
 0x2b9   : > { %v1407_v8 = vpop.eup %1406  ;;  %v551_v9 = vmul.f32 %v1405_v7, %v549_v5  ;;  %v618_v10 = vpop.xlane.xlu2 %617  ;;  %vm556_vm3 = vweird.f32 %v1405_v7 }
 0x2ba   : > { %v698_v11 = vmul.f32 %v1407_v8, %v696_v6  ;;  %1408 = vrcp.f32 %v618_v10  ;;  %vm703_vm4 = vweird.f32 %v1407_v8  ;;  %vm557_vm6 = vmor %vm555_vm5, %vm556_vm3  ;;  %v630_v35 = vand.u32 2147483648, %v618_v10 }
 0x2bb   : > { %v552_v12 = vsub.f32 1.0, %v551_v9  ;;  %vm704_vm9 = vmor %vm702_vm7, %vm703_vm4  ;;  %v628_v38 = vand.u32 2147483647, %v618_v10  ;;  %vm624_vm12 = vweird.f32 %v618_v10  ;;  %v1295_v9 = vld [vmem:[%s1971_s5 + $0x8] sm:$0xff] }
 0x2bc   : > { %v699_v14 = vsub.f32 1.0, %v698_v11  ;;  %v631_v43 = vor.u32 1.1754944e-38, %v630_v35  ;;  %847 = vmatpush.bf16.msra.mxu1 %v1295_v9  ;;  %v1296_v35 = vld [vmem:[%s1972_s6] sm:$0xff] }
 0x2bd   : > { %v553_v15 = vmul.f32 %v1405_v7, %v552_v12  ;;  %vm629_vm14 = vcmp.eq.f32.partialorder %v628_v38, 8.507059e+37 }
 0x2be   : > { %v700_v18 = vmul.f32 %v1407_v8, %v699_v14 }
 0x2bf   : > { %v554_v20 = vadd.f32 %v1405_v7, %v553_v15 }
 0x2c0   : > { %v1409_v21 = vpop.eup %1408  ;;  %v701_v23 = vadd.f32 %v1407_v8, %v700_v18 }
 0x2c1   : > { %v558_v24 = vsel %vm557_vm6, %v1405_v7, %v554_v20  ;;  %v620_v26 = vmul.f32 %v1409_v21, %v618_v10  ;;  %v639_v27 = vpop.permute.xlu2 %638  ;;  %vm625_vm11 = vweird.f32 %v1409_v21  ;;  %v1294_v10 = vld [vmem:[%s1971_s5] sm:$0xff]  ;;  %vm813_vm6 = vcmask 261312  }
 0x2c2   : > { %v705_v28 = vsel %vm704_vm9, %v1407_v8, %v701_v23  ;;  %v644_v30 = vsel %vm569_vm2, %v639_v27, 0  ;;  %v563_v31 = vsel %vm560_vm8, %v562_v22, %v558_v24  ;;  %vm626_vm13 = vmor %vm624_vm12, %vm625_vm11  ;;  %848 = vmatpush.bf16.msra.mxu1 %v1294_v10  ;;  %v1625_v22 = vmov 32.0  }
 0x2c3   : > { %v621_v32 = vsub.f32 1.0, %v620_v26  ;;  %653 = vmatpush.bf16.msra.mxu0 %v644_v30  ;;  %v564_v33 = vmul.f32 %v1809_v54, %v563_v31  ;;  %v710_v34 = vsel %vm707_vm10, %v709_v25, %v705_v28 }
 0x2c4   : > { %v711_v36 = vmul.f32 %v1811_v56, %v710_v34  ;;  %v1297_v34 = vld [vmem:[%s1972_s6 + $0x8] sm:$0xff] }
 0x2c5   : > { %v622_v37 = vmul.f32 %v1409_v21, %v621_v32  ;;  %v714_v39 = vpop.permute.xlu0 %713  ;;  %v565_v40 = vpack.c.bf16 %v564_v33, %v564_v33  ;;  %815 = vst.msk [vmem:[%s1835_s12] sm:$0xff] %vm521_vm1, %v564_v33 }
 0x2c6   : > { %v719_v41 = vsel %vm569_vm2, %v714_v39, 0  ;;  %817 = vst.msk [vmem:[%s1835_s12 + $0x10] sm:$0xff] %vm521_vm1, %v711_v36  ;;  %v712_v44 = vpack.c.bf16 %v711_v36, %v711_v36  ;;  %v1305_v36 = vld [vmem:[%s1974_s8 + $0x38] sm:$0xff]  ;;  %v1304_v39 = vld [vmem:[%s1974_s8 + $0x30] sm:$0xff] }
 0x2c7   : > { %v623_v42 = vadd.f32 %v1409_v21, %v622_v37  ;;  %1226 = vmatmul.msk.bf16.vlgmr.msrb.gmra.mxu0 %vm521_vm1, %v565_v40  ;;  %728 = vmatpush.bf16.msrb.mxu2 %v719_v41  ;;  %v1303_v41 = vld [vmem:[%s1974_s8 + $0x28] sm:$0xff] }
 0x2c8   : > { %992 = vmatpush.bf16.msra.mxu3 %v1305_v36 }
 0x2c9   : > { %v627_v45 = vsel %vm626_vm13, %v1409_v21, %v623_v42  ;;  %v771_v46 = vpop.xlane.xlu1 %770  ;;  %v1302_v42 = vld [vmem:[%s1974_s8 + $0x20] sm:$0xff] }
 0x2ca   : > { %v632_v47 = vsel %vm629_vm14, %v631_v43, %v627_v45  ;;  %1410 = vrcp.f32 %v771_v46  ;;  %1230 = vmatmul.msk.bf16.vlgmr.msrb.gmra.mxu2 %vm521_vm1, %v712_v44  ;;  %v783_v52 = vand.u32 2147483648, %v771_v46  ;;  %v781_v54 = vand.u32 2147483647, %v771_v46  ;;  %v1301_v45 = vld [vmem:[%s1974_s8 + $0x18] sm:$0xff] }
 0x2cb   : > { %v633_v48 = vmul.f32 %v1817_v59, %v632_v47  ;;  %vm777_vm3 = vweird.f32 %v771_v46  ;;  %1412 = vrcp.f32 %v1625_v22  ;;  %918 = vmatpush.bf16.msra.mxu2 %v1297_v34 }
 0x2cc   : > { %v784_v57 = vor.u32 1.1754944e-38, %v783_v52  ;;  %vm782_vm5 = vcmp.eq.f32.partialorder %v781_v54, 8.507059e+37  ;;  %993 = vmatpush.bf16.msra.mxu3 %v1304_v39  ;;  %v886_v54 = vperm.slane %v1801_v29, 4 }
 0x2cd   : > { %816 = vst.msk [vmem:[%s1835_s12 + $0x8] sm:$0xff] %vm521_vm1, %v633_v48  ;;  %v634_v55 = vpack.c.bf16 %v633_v48, %v633_v48  ;;  %v1300_v48 = vld [vmem:[%s1974_s8 + $0x10] sm:$0xff] }
 0x2cf   : > { %919 = vmatpush.bf16.msra.mxu2 %v1296_v35 }
 0x2d0   : > { %v1411_v49 = vpop.eup %1410  ;;  %994 = vmatpush.bf16.msra.mxu3 %v1303_v41 }
 0x2d1   : > { %v773_v50 = vmul.f32 %v1411_v49, %v771_v46  ;;  %vm778_vm15 = vweird.f32 %v1411_v49  ;;  %v1413_v23 = vpop.eup %1412 }
 0x2d2   : > { %vm779_vm4 = vmor %vm777_vm3, %vm778_vm15  ;;  %v859_v24 = vmul.f32 32.0, %v1413_v23  ;;  %vm863_vm7 = vweird.f32 %v1413_v23 }
 0x2d3   : > { %v774_v51 = vsub.f32 1.0, %v773_v50 }
 0x2d4   : > { %v860_v25 = vsub.f32 1.0, %v859_v24  ;;  %995 = vmatpush.bf16.msra.mxu3 %v1302_v42 }
 0x2d5   : > { %v775_v53 = vmul.f32 %v1411_v49, %v774_v51  ;;  %v884_v51 = vperm.slane %v1801_v29, 3 }
 0x2d6   : > { %v861_v26 = vmul.f32 %v1413_v23, %v860_v25 }
 0x2d7   : > { %v776_v56 = vadd.f32 %v1411_v49, %v775_v53  ;;  %1228 = vmatmul.msk.bf16.vlgmr.msra.gmra.mxu0 %vm521_vm1, %v634_v55 }
 0x2d8   : > { %v862_v27 = vadd.f32 %v1413_v23, %v861_v26  ;;  %996 = vmatpush.bf16.msra.mxu3 %v1301_v45 }
 0x2d9   : > { %v780_v58 = vsel %vm779_vm4, %v1411_v49, %v776_v56 }
 0x2da   : > { %v785_v59 = vsel %vm782_vm5, %v784_v57, %v780_v58  ;;  %v1868_v28 = vsel %vm863_vm7, %v1413_v23, %v862_v27  ;;  %v1299_v58 = vld [vmem:[%s1974_s8 + $0x8] sm:$0xff] }
 0x2db   : > { %v786_v60 = vmul.f32 %v1822_v3, %v785_v59  ;;  %v1298_v59 = vld [vmem:[%s1974_s8] sm:$0xff] }
 0x2dc   : > { %997 = vmatpush.bf16.msra.mxu3 %v1300_v48 }
 0x2dd   : > { %818 = vst.msk [vmem:[%s1835_s12 + $0x18] sm:$0xff] %vm521_vm1, %v786_v60  ;;  %v787_v63 = vpack.c.bf16 %v786_v60, %v786_v60  ;;  %v1395_v60 = vld [vmem:[#allocation8] ss:$0 sm:$0xff] }
 0x2e0   : > { %998 = vmatpush.bf16.msra.mxu3 %v1299_v58 }
 0x2e1   : > { %v789_v61 = vpop.permute.xlu1 %788 }
 0x2e2   : > { %v794_v62 = vsel %vm569_vm2, %v789_v61, 0  ;;  %vm738_vm2 = vcmask 195712  }
 0x2e3   : > { %803 = vmatpush.bf16.msrb.mxu0 %v794_v62 }
 0x2e4   : > { %999 = vmatpush.bf16.msra.mxu3 %v1298_v59 }
 0x2e7   : > { %1232 = vmatmul.msk.bf16.vlgmr.msrb.gmra.mxu0 %vm521_vm1, %v787_v63 }
 0x344   : > { %v582_v0 = vpop.f32.mrf.mxu0 }
 0x345   : > { %586 = vst.msk [vmem:[#allocation2] sm:$0xff] %vm521_vm1, %v582_v0  ;;  %vm663_vm1 = vcmask 130112  }
 0x34c   : > { %v584_v2 = vpop.f32.mrf.mxu0 }
 0x34d   : > { %v730_v4 = vpop.f32.mrf.mxu2 }
 0x34e   : > { %735 = vrot.lane.b32.xlu2 %v730_v4, %s1622_s14  ;;  %v943_v4 = vperm.slane %v1801_v29, 2  ;;  %s1065_s14 = sshll.u32 %s1835_s12, 4  ;;  %s1066_s14 = int_to_ptr.vmem [resolvable:$true] %s1065_s14 }
 0x354   : > { %v655_v5 = vpop.f32.mrf.mxu0 }
 0x355   : > { %660 = vrot.lane.b32.xlu0 %v655_v5, %s1979_s3  ;;  %v732_v3 = vpop.f32.mrf.mxu2 }
 0x35c   : > { %v657_v6 = vpop.f32.mrf.mxu0 }
 0x364   : > { %v805_v7 = vpop.f32.mrf.mxu0 }
 0x365   : > { %810 = vrot.lane.b32.xlu1 %v805_v7, %s1624_s19  ;;  %s1067_s19 = sshll.u32 %s1064_s30, 4  ;;  %s1068_s19 = int_to_ptr.hbm [resolvable:$true] %s1067_s19 }
 0x366   : > { %s1522_s29 = sshra.s32 %s1068_s19, 4  ;;  %s1523_s29 = int_to_ptr.hbm [resolvable:$true] %s1522_s29 }
 0x367   : > { %s1524_s13 = scalar_lea.hbm %s1523_s29, 32  ;;  %p1529_p3 = scmp.lt.s32.totalorder %s1523_s29, %s1977_s11 }
 0x368   : > { %p1525_p0 = scmp.ne.s32.totalorder %s1523_s29, %s1524_s13  ;;  %p1530_p4 = scmp.lt.s32.totalorder %s1528_s0, %s1524_s13 }
 0x36a   : > { %p1526_p1 = pnand %p1525_p0, %p1725_p5  ;;  %p1531_p7 = por %p1530_p4, %p1529_p3 }
 0x36c   : > { %v807_v8 = vpop.f32.mrf.mxu0  ;;  %p1527_p2 = pneg %p1526_p1 }
 0x36e   : > { %p1532_p8 = pnand %p1531_p7, %p1527_p2 }
 0x3a8   : > { %v736_v12 = vpop.permute.xlu2 %735 }
 0x3c7   : > { %v661_v11 = vpop.permute.xlu0 %660 }
 0x3c8   : > { %664 = vst.msk [vmem:[#allocation2] sm:$0xff] %vm663_vm1, %v661_v11 }
 0x3c9   : > { %739 = vst.msk [vmem:[#allocation2] sm:$0xff] %vm738_vm2, %v736_v12 }
 0x3d7   : > { %v811_v13 = vpop.permute.xlu1 %810 }
 0x3d8   : > { %814 = vst.msk [vmem:[#allocation2] sm:$0xff] %vm813_vm6, %v811_v13 }
 0x3df   : > { %v819_v14 = vld [vmem:[#allocation2] sm:$0xff] }
 0x3e0   : > { %v820_v15 = vpack.c.bf16 %v819_v14, %v819_v14 }
 0x3e2   : > { %1241 = vmatmul.msk.bf16.vlgmr.msra.gmra.mxu1 %vm463_vm0, %v820_v15 }
 0x45f   : > { %v850_v17 = vpop.f32.mrf.mxu1 }
 0x460   : > { %v851_v18 = vadd.f32 %v850_v17, %v825_v16 }
 0x462   : > { %v1864_v19 = vadd.f32 %v851_v18, %v1771_v1 }
 0x464   : > { %v855_v20 = vsel %vm463_vm0, %v1864_v19, 0.0 }
 0x465   : > { %856 = vadd.xlane.f32.xlu0 %v855_v20 }
 0x467   : > { %v852_v21 = vpop.f32.mrf.mxu1 }
 0x4d8   : > { %v857_v30 = vpop.xlane.xlu0 %856 }
 0x4d9   : > { %v865_v31 = vmul.f32 %v1868_v28, %v857_v30 }
 0x4db   : > { %v866_v1 = vsub.f32 %v1864_v19, %v865_v31 }
 0x4dd   : > { %v867_v32 = vmul.f32 %v866_v1, %v866_v1 }
 0x4df   : > { %v868_v33 = vsel %vm463_vm0, %v867_v32, 0.0 }
 0x4e0   : > { %869 = vadd.xlane.f32.xlu2 %v868_v33 }
 0x553   : > { %v870_v37 = vpop.xlane.xlu2 %869 }
 0x554   : > { %v871_v38 = vmul.f32 %v870_v37, %v1868_v28 }
 0x556   : > { %v872_v40 = vadd.f32 1e-05, %v871_v38 }
 0x558   : > { %1414 = vrsqrt.f32 %v872_v40  ;;  %vm879_vm9 = vweird.f32 %v872_v40 }
 0x55e   : > { %v1415_v43 = vpop.eup %1414 }
 0x55f   : > { %v874_v44 = vmul.f32 %v1415_v43, %v872_v40  ;;  %vm880_vm8 = vweird.f32 %v1415_v43 }
 0x560   : > { %vm881_vm10 = vmor %vm879_vm9, %vm880_vm8 }
 0x561   : > { %v875_v46 = vmul.f32 %v1415_v43, %v874_v44 }
 0x563   : > { %v876_v47 = vmul.f32 0.5, %v875_v46 }
 0x565   : > { %v877_v49 = vsub.f32 1.5, %v876_v47 }
 0x567   : > { %v878_v50 = vmul.f32 %v1415_v43, %v877_v49 }
 0x569   : > { %v882_v52 = vsel %vm881_vm10, %v1415_v43, %v878_v50 }
 0x56a   : > { %v883_v53 = vmul.f32 %v882_v52, %v866_v1 }
 0x56c   : > { %v885_v55 = vmul.f32 %v884_v51, %v883_v53 }
 0x56e   : > { %v887_v56 = vadd.f32 %v886_v54, %v885_v55 }
 0x570   : > { %v888_v57 = vpack.c.bf16 %v887_v56, %v887_v56 }
 0x572   : > { %1250 = vmatmul.msk.bf16.vlgmr.msra.gmra.mxu2 %vm463_vm0, %v888_v57 }
 0x5f5   : > { %v921_v61 = vpop.f32.mrf.mxu2 }
 0x5f6   : > { %v922_v62 = vadd.f32 %v1395_v60, %v921_v61 }
 0x5f8   : > { %v925_v63 = vmax.f32 %v922_v62, 0.0 }
 0x5fa   : > { %v926_v0 = vpack.c.bf16 %v925_v63, %v925_v63 }
 0x5fc   : > { %1000 = vmatmul.bf16.vlgmr.msra.gmra.mxu3 %v926_v0 }
 0x5fd   : > { %v923_v2 = vpop.f32.mrf.mxu2 }
 0x67f   : > { %v1001_v5 = vpop.f32.mrf.mxu3 }
 0x680   : > { %v1002_v3 = vadd.f32 %v1001_v5, %v943_v4 }
 0x682   : > { %v1005_v6 = vadd.f32 %v1002_v3, %v1864_v19 }
 0x684   : > { %v1006_v7 = vsel %vm463_vm0, %v1005_v6, 0.0 }
 0x685   : > { %1007 = vadd.xlane.f32.xlu1 %v1006_v7 }
 0x687   : > { %v1003_v8 = vpop.f32.mrf.mxu3 }
 0x6f8   : > { %v1008_v9 = vpop.xlane.xlu1 %1007 }
 0x6f9   : > { %v1009_v10 = vmul.f32 %v1008_v9, %v1868_v28 }
 0x6fb   : > { %v1010_v11 = vsub.f32 %v1005_v6, %v1009_v10 }
 0x6fd   : > { %v1011_v12 = vmul.f32 %v1010_v11, %v1010_v11 }
 0x6ff   : > { %v1012_v13 = vsel %vm463_vm0, %v1011_v12, 0.0 }
 0x700   : > { %1013 = vadd.xlane.f32.xlu0 %v1012_v13 }
 0x701   : > { %1535 = shalt.err (!%p1532_p8)
}
 0x702   : > { %s1626_s12 = smov 128   ;;  %s1993_s16 = smov 8   ;;  %v1028_v23 = vperm.slane %v1801_v29, 5  ;;  %v1030_v26 = vperm.slane %v1801_v29, 6 }
 0x703   : > { %1320 = dma.vmem_to_hbm [thread:$0]  (%p1725_p5), %s1066_s14, 512, %s1068_s19, %s1039_s26, %s1626_s12, %s1626_s12, %s1993_s16  }
 0x704   : > { %s1204_s0 = sshll.u32 %s1829_s25, 3  ;;  %s1285_s1 = sshll.u32 %s1708_s21, 3 }
 0x705   : > { %s1049_s22 = scalar_lea.hbm %s1976_s10, %s1285_s1  ;;  %s425_s24 = scalar_lea.vmem [#allocation9], %s1204_s0 }
 0x706   : > { %s1051_s30 = sshll.u32 %s425_s24, 4  ;;  %s1053_s14 = sshll.u32 %s1049_s22, 4  ;;  %s1052_s30 = int_to_ptr.vmem [resolvable:$true] %s1051_s30  ;;  %s1054_s14 = int_to_ptr.hbm [resolvable:$true] %s1053_s14 }
 0x707   : > { %s1034_s21 = scalar_lea.sflag [#allocation5], %s1829_s25  ;;  %s1550_s19 = sshra.s32 %s1054_s14, 4  ;;  %s1551_s19 = int_to_ptr.hbm [resolvable:$true] %s1550_s19 }
 0x708   : > { %s1552_s26 = scalar_lea.hbm %s1551_s19, 8  ;;  %s1556_s15 = scalar_lea.hbm %s1976_s10, 16 }
 0x709   : > { %p1553_p9 = scmp.ne.s32.totalorder %s1551_s19, %s1552_s26  ;;  %p1557_p12 = scmp.lt.s32.totalorder %s1551_s19, %s1976_s10 }
 0x70a   : > { %p1558_p13 = scmp.lt.s32.totalorder %s1556_s15, %s1552_s26 }
 0x70b   : > { %p1554_p10 = pnand %p1553_p9, %p1725_p5 }
 0x70c   : > { %p1559_p0 = por %p1558_p13, %p1557_p12 }
 0x70d   : > { %p1555_p11 = pneg %p1554_p10 }
 0x70f   : > { %p1560_p1 = pnand %p1559_p0, %p1555_p11 }
 0x773   : > { %v1014_v14 = vpop.xlane.xlu0 %1013 }
 0x774   : > { %v1015_v15 = vmul.f32 %v1014_v14, %v1868_v28 }
 0x776   : > { %v1016_v16 = vadd.f32 1e-05, %v1015_v15 }
 0x778   : > { %1416 = vrsqrt.f32 %v1016_v16  ;;  %vm1023_vm12 = vweird.f32 %v1016_v16 }
 0x77e   : > { %v1417_v17 = vpop.eup %1416 }
 0x77f   : > { %v1018_v18 = vmul.f32 %v1417_v17, %v1016_v16  ;;  %vm1024_vm11 = vweird.f32 %v1417_v17 }
 0x780   : > { %vm1025_vm13 = vmor %vm1023_vm12, %vm1024_vm11 }
 0x781   : > { %v1019_v19 = vmul.f32 %v1417_v17, %v1018_v18 }
 0x783   : > { %v1020_v20 = vmul.f32 0.5, %v1019_v19 }
 0x785   : > { %v1021_v21 = vsub.f32 1.5, %v1020_v20 }
 0x787   : > { %v1022_v22 = vmul.f32 %v1417_v17, %v1021_v21 }
 0x789   : > { %v1026_v24 = vsel %vm1025_vm13, %v1417_v17, %v1022_v22 }
 0x78a   : > { %v1027_v25 = vmul.f32 %v1026_v24, %v1010_v11 }
 0x78c   : > { %v1029_v27 = vmul.f32 %v1028_v23, %v1027_v25 }
 0x78e   : > { %v1031_v28 = vadd.f32 %v1030_v26, %v1029_v27 }
 0x790   : > { %1032 = vst.msk [vmem:[%s425_s24] sm:$0xff] %vm463_vm0, %v1031_v28 }
 0x791   : > { %1563 = shalt.err (!%p1560_p1)
}
 0x792   : > { %1319 = dma.vmem_to_hbm [thread:$0]  (%p1725_p5), %s1052_s30, 128, %s1054_s14, %s1034_s21  }
 0x793 PF: > { %p1346_p2 = scmp.ge.s32.totalorder %s1610_s20, 2  ;;  %s1082_s25 = sand.u32 1, %s1598_s17  }
 0x794   : > { %s1083_s0 = scalar_lea.sflag [#allocation5], %s1082_s25 }
 0x795   : > { %p1334_p3 = pnand %p1346_p2, %p1729_p6 }
 0x797   : > { %p1335_p4 = pneg %p1334_p3 }
 0x799   : > { %1589 = dma.done.wait (%p1335_p4), %s1083_s0, 128  }
 0x79a   : > { %1591 = vsyncadd (%p1335_p4), %s1083_s0, 4294967168  ;;  %s1093_s1 = scalar_lea.sflag [#allocation11], %s1082_s25 }
 0x79b   : > { %1593 = dma.done.wait (%p1335_p4), %s1093_s1, 512  }
 0x79c   : > { %1595 = vsyncadd (%p1335_p4), %s1093_s1, 4294966784  ;;  %s1994_s2 = sld [smem:[#allocation16_spill]]  ;;  %p27_p5 = scmp.ge.s32.totalorder %s1712_s23, 4  }
 0x79d   : > { %s1995_s19 = sld [smem:[#allocation17_spill]]  ;;  %s1996_s17 = smov %s1602_s18 }
 0x79e   : > { %s1998_s20 = smov %s1712_s23  ;;  %29 = sbr.rel (!%p27_p5) target bundleno = 12 (0xc), region = 125 }
 0x7a2   : > { %s1997_s18 = smov %s1994_s2 }
 0x7a3   :  { %1099 = vsyncpa [#allocation4], 1 }
 0x7a4   :  { %1101 = vsyncpa [#allocation4 + $0x1], 1 }
 0x7a5   :  { %1102 = vsyncpa [#allocation7], 1 }
 0x7a6   :  { %1103 = vsyncpa [#allocation5], 1 }
 0x7a7   :  { %1105 = vsyncpa [#allocation5 + $0x1], 1 }
 0x7a8   :  { %1106 = vsyncpa [#allocation11], 1 }
 0x7a9   :  { %1108 = vsyncpa [#allocation11 + $0x1], 1 }

</bundles_post_ra>
